<compile_context>
chip_gen: v7x
topology: tpu7x:2x2x1
jax: 0.10.0
libtpu: 0.0.40
codegen_flags: <defaults>
</compile_context>

<pallas_src>
import math
import functools

import jax
import jax.numpy as jnp
from jax.experimental import pallas as pl
from jax.experimental.pallas import tpu as pltpu

_SUBLANES = 8
_NEG_BIG = -1e30  # finite "-inf" for masking zero-padded keys


def _round_up(x, m):
    return ((x + m - 1) // m) * m


def _hyper_ca_kernel(q_ref, kv_ref, o_ref, m_ref, l_ref,
                     *, n_keys, tk, kv_resident):
    """One (q_tile, k_tile) step of flash-style hyperbolic cross-attention.

    q_ref : [tq, D] bf16, already scaled by 2/scale with time coord negated.
    kv_ref: [nk_pad, D] bf16 (resident) or [tk, D] bf16 (streamed); key==value.
    o_ref : [tq, D] f32 output block, doubles as the f32 accumulator.
    m_ref, l_ref: [tq, 1] f32 running max / running sum scratch.
    """
    ki = pl.program_id(1)
    n_k_steps = pl.num_programs(1)

    if kv_resident:
        start = pl.multiple_of(ki * tk, tk)
        kv = kv_ref[pl.ds(start, tk), :]          # slice of the VMEM-resident KV
    else:
        kv = kv_ref[...]                           # streamed tile

    # logits = (2/scale) * cinner(q, k); the dropped (+2/scale + bias) shift is
    # softmax-invariant. bf16 operands, f32 accumulation on the MXU.
    s = jax.lax.dot_general(q_ref[...], kv, (((1,), (1,)), ((), ())),
                            preferred_element_type=jnp.float32)   # [tq, tk]

    if n_keys % tk != 0:
        # Only the last k tile contains zero-padded keys: one tiny [1, tk]
        # compare + a broadcast add (instead of a full [tq, tk] iota/where on
        # every step).
        is_last = ki == n_k_steps - 1
        kidx = ki * tk + jax.lax.broadcasted_iota(jnp.int32, (1, tk), 1)
        s = s + jnp.where(jnp.logical_and(is_last, kidx >= n_keys),
                          _NEG_BIG, 0.0)

    row_max = jnp.max(s, axis=-1, keepdims=True)                  # [tq, 1]

    @pl.when(ki == 0)
    def _first_step():
        # No zero-init + multiply-by-zero pass: write the first tile directly.
        p = jnp.exp(s - row_max)
        m_ref[...] = row_max
        l_ref[...] = jnp.sum(p, axis=-1, keepdims=True)
        o_ref[...] = jnp.dot(p.astype(kv.dtype), kv,
                             preferred_element_type=jnp.float32)

    @pl.when(ki > 0)
    def _online_update():
        m_prev = m_ref[...]
        m_new = jnp.maximum(m_prev, row_max)
        alpha = jnp.exp(m_prev - m_new)
        p = jnp.exp(s - m_new)
        l_ref[...] = alpha * l_ref[...] + jnp.sum(p, axis=-1, keepdims=True)
        o_ref[...] = alpha * o_ref[...] + jnp.dot(p.astype(kv.dtype), kv,
                                                  preferred_element_type=jnp.float32)
        m_ref[...] = m_new

    @pl.when(ki == n_k_steps - 1)
    def _finalize():
        ave = o_ref[...] * pl.reciprocal(l_ref[...], approx=True)  # [tq, D]
        # mid_point with attention weights: Lorentz-normalize (time = col 0).
        sq = ave * ave
        t = sq[:, 0:1]
        sp = jnp.sum(sq, axis=-1, keepdims=True) - t
        head = ave * jax.lax.rsqrt(jnp.maximum(jnp.abs(t - sp), 1e-8))
        # mid_point over heads: identical heads -> mean == head; keep the second
        # normalization for exact forward semantics (cheap; matters only in the
        # clamp's degenerate case).
        sq2 = head * head
        t2 = sq2[:, 0:1]
        sp2 = jnp.sum(sq2, axis=-1, keepdims=True) - t2
        o_ref[...] = head * jax.lax.rsqrt(jnp.maximum(jnp.abs(t2 - sp2), 1e-8))


def hyper_ca_forward(query_input, source_input, scale, bias, num_heads):
    """Forward pass of hyperCALayer.

    `bias` is a uniform shift on the softmax logits (shift-invariant -> no
    effect) and the `num_heads` identical heads collapse to one, so neither
    enters the kernel; both stay in the signature to mirror the PyTorch module.
    """
    del bias, num_heads  # see docstring
    N, D = query_input.shape
    Nk, Dk = source_input.shape
    assert D == Dk, "query and source must share the Lorentz ambient dim"

    tq = min(128, _round_up(N, _SUBLANES))
    tk = min(256, _round_up(Nk, _SUBLANES))
    nq_pad = _round_up(N, tq)
    nk_pad = _round_up(Nk, tk)

    # Fold (2/scale) and the cinner time-sign flip into the q padding copy that
    # already exists; cast both matmul operands to bf16 (f32 accumulate in-kernel).
    c = 2.0 / jnp.asarray(scale, jnp.float32).reshape(-1)[0]
    sign = jnp.concatenate([jnp.full((1,), -1.0, jnp.float32),
                            jnp.ones((D - 1,), jnp.float32)])
    q_scaled = (query_input.astype(jnp.float32) * (c * sign)).astype(jnp.bfloat16)
    q = jnp.zeros((nq_pad, D), jnp.bfloat16).at[:N].set(q_scaled)
    kv = jnp.zeros((nk_pad, D), jnp.bfloat16).at[:Nk].set(
        source_input.astype(jnp.bfloat16))

    # Resident KV if it fits a conservative VMEM budget (safe for v7x's 64 MiB
    # even double-buffered); otherwise stream k tiles from HBM.
    kv_bytes = nk_pad * D * 2
    kv_resident = kv_bytes <= 16 * 1024 * 1024
    if kv_resident:
        kv_spec = pl.BlockSpec((nk_pad, D), lambda qi, ki: (0, 0))
    else:
        kv_spec = pl.BlockSpec((tk, D), lambda qi, ki: (ki, 0))

    kernel = functools.partial(_hyper_ca_kernel, n_keys=Nk, tk=tk,
                               kv_resident=kv_resident)
    out = pl.pallas_call(
        kernel,
        out_shape=jax.ShapeDtypeStruct((nq_pad, D), jnp.float32),
        grid=(nq_pad // tq, nk_pad // tk),
        in_specs=[
            pl.BlockSpec((tq, D), lambda qi, ki: (qi, 0)),   # query tile (bf16)
            kv_spec,                                          # key == value (bf16)
        ],
        out_specs=pl.BlockSpec((tq, D), lambda qi, ki: (qi, 0)),
        scratch_shapes=[
            pltpu.VMEM((tq, 1), jnp.float32),   # running max
            pltpu.VMEM((tq, 1), jnp.float32),   # running sum
        ],
        compiler_params=pltpu.CompilerParams(
            dimension_semantics=("parallel", "arbitrary"),
            vmem_limit_bytes=(48 * 1024 * 1024) if kv_resident else None),
    )(q, kv)
    return out[:N, :D]


def _reference(query_input, source_input, scale, bias, num_heads):
    """Pure-JAX replica of the PyTorch forward for verification."""
    qs = jnp.stack([query_input] * num_heads, axis=0)    # [H, N, D]
    ks = jnp.stack([source_input] * num_heads, axis=0)
    vs = jnp.stack([source_input] * num_heads, axis=0)
    qf = qs.at[..., 0].multiply(-1.0)
    att = 2.0 + 2.0 * jnp.einsum('hnd,hmd->hnm', qf, ks)
    att = att / scale[0] + bias[0]
    att = jax.nn.softmax(att, axis=-1)
    ave = jnp.einsum('hnm,hmd->hnd', att, vs)

    def lorentz_denom(a):
        sq = a * a
        t = sq[..., 0:1]
        s = jnp.sum(sq, axis=-1, keepdims=True) - t
        return jnp.sqrt(jnp.maximum(jnp.abs(t - s), 1e-8))

    out = ave / lorentz_denom(ave)                       # [H, N, D]
    out = jnp.transpose(out, (1, 0, 2))                  # [N, H, D]
    mean = jnp.mean(out, axis=-2)                        # [N, D]
    return mean / lorentz_denom(mean)


if __name__ == "__main__":
    in_channels = 7
    out_channels = 7
    num_heads = 2
    N = 16
    D = in_channels + 1   # Lorentz ambient dimension (time + space coords)

    key = jax.random.PRNGKey(0)
    k1, k2 = jax.random.split(key)

    # Inputs live on the Lorentz hyperboloid (time = sqrt(1 + |space|^2)), as
    # hyperCALayer expects; this also keeps |<ave,ave>_L| >= 1 so the mid_point
    # normalizations are well conditioned.
    def on_hyperboloid(k, n, d):
        space = 0.5 * jax.random.normal(k, (n, d - 1), dtype=jnp.float32)
        time = jnp.sqrt(1.0 + jnp.sum(space * space, axis=-1, keepdims=True))
        return jnp.concatenate([time, space], axis=-1)

    query_input = on_hyperboloid(k1, N, D)
    source_input = on_hyperboloid(k2, N, D)

    # Parameter init matching hyperCALayer.__init__:
    scale = jnp.array([math.sqrt(out_channels)], dtype=jnp.float32)
    bias = jnp.array([0.0], dtype=jnp.float32)
    # TODO(synk): Wq/Wk/Wv (HypLinear), norm_scale and v_map_mlp are created in
    # __init__ but never used in the reference forward pass, so they are omitted.

    out = hyper_ca_forward(query_input, source_input, scale, bias, num_heads)
    out = jax.block_until_ready(out)

    ref = _reference(query_input, source_input, scale, bias, num_heads)
    assert out.shape == (N, D)
    # Tolerance accommodates bf16 MXU products (f32 accumulate) plus the EUP
    # approximate reciprocal in the softmax normalization; values are O(1).
    assert jnp.allclose(out, ref, rtol=2e-2, atol=2e-2), "mismatch vs reference"

    print("KERNEL_OK")
</pallas_src>

<mosaic_0001>
module attributes {stable_mosaic.version = 11 : i64} {
  func.func @_hyper_ca_kernel(%arg0: i32, %arg1: i32, %arg2: memref<16x8xbf16, #tpu.memory_space<vmem>>, %arg3: memref<16x8xbf16, #tpu.memory_space<vmem>>, %arg4: memref<16x8xf32, #tpu.memory_space<vmem>>, %arg5: memref<16x1xf32, #tpu.memory_space<vmem>>, %arg6: memref<16x1xf32, #tpu.memory_space<vmem>>) attributes {dimension_semantics = [#tpu.dimension_semantics<parallel>, #tpu.dimension_semantics<arbitrary>], iteration_bounds = array<i64: 1, 1>, scalar_prefetch = 0 : i64, scratch_operands = 2 : i64, tpu.core_type = #tpu.core_type<tc>, window_params = [{transform_indices = @transform_0, window_bounds = array<i64: 16, 8>}, {pipeline_mode = #tpu.pipeline_mode<synchronous>, transform_indices = @transform_1, window_bounds = array<i64: 16, 8>}, {transform_indices = @transform_2, window_bounds = array<i64: 16, 8>}]} {
    %c16_i32 = arith.constant 16 : i32
    %0 = arith.muli %arg1, %c16_i32 : i32
    %1 = tpu.assume_multiple %0, 16 : i32
    %2 = arith.index_cast %1 : i32 to index
    %c0 = arith.constant 0 : index
    %3 = vector.load %arg3[%2, %c0] : memref<16x8xbf16, #tpu.memory_space<vmem>>, vector<16x8xbf16>
    %c0_0 = arith.constant 0 : index
    %c0_1 = arith.constant 0 : index
    %4 = vector.load %arg2[%c0_0, %c0_1] : memref<16x8xbf16, #tpu.memory_space<vmem>>, vector<16x8xbf16>
    %cst = arith.constant dense<0.000000e+00> : vector<16x16xf32>
    %5 = tpu.matmul %4, %3, %cst {dimension_numbers = #tpu.dot_dimension_numbers<[1], [1], [0], [0], [0, 0, 1, 0], [], []>} : vector<16x8xbf16>, vector<16x8xbf16>, vector<16x16xf32> -> vector<16x16xf32>
    %cst_2 = arith.constant dense<0xFF800000> : vector<16xf32>
    %6 = vector.multi_reduction <maximumf>, %5, %cst_2 [1] : vector<16x16xf32> to vector<16xf32>
    %7 = vector.shape_cast %6 : vector<16xf32> to vector<16x1xf32>
    %c0_i32 = arith.constant 0 : i32
    %8 = arith.cmpi eq, %arg1, %c0_i32 : i32
    %9 = arith.extui %8 : i1 to i32
    %c0_i32_3 = arith.constant 0 : i32
    %10 = arith.cmpi ne, %9, %c0_i32_3 : i32
    scf.if %10 {
      %17 = vector.broadcast %7 : vector<16x1xf32> to vector<16x16xf32>
      %18 = arith.subf %5, %17 : vector<16x16xf32>
      %19 = math.exp %18 : vector<16x16xf32>
      %c0_8 = arith.constant 0 : index
      %c0_9 = arith.constant 0 : index
      %20 = vector.load %arg5[%c0_8, %c0_9] : memref<16x1xf32, #tpu.memory_space<vmem>>, vector<16x1xf32>
      tpu.vector_store %arg5[%c0_8, %c0_9], %7 {strides = array<i32>} : memref<16x1xf32, #tpu.memory_space<vmem>>, vector<16x1xf32>,
      %cst_10 = arith.constant dense<0.000000e+00> : vector<16xf32>
      %21 = vector.multi_reduction <add>, %19, %cst_10 [1] : vector<16x16xf32> to vector<16xf32>
      %22 = vector.shape_cast %21 : vector<16xf32> to vector<16x1xf32>
      %c0_11 = arith.constant 0 : index
      %c0_12 = arith.constant 0 : index
      %23 = vector.load %arg6[%c0_11, %c0_12] : memref<16x1xf32, #tpu.memory_space<vmem>>, vector<16x1xf32>
      tpu.vector_store %arg6[%c0_11, %c0_12], %22 {strides = array<i32>} : memref<16x1xf32, #tpu.memory_space<vmem>>, vector<16x1xf32>,
      %24 = arith.truncf %19 : vector<16x16xf32> to vector<16x16xbf16>
      %cst_13 = arith.constant dense<0.000000e+00> : vector<16x8xf32>
      %25 = tpu.matmul %24, %3, %cst_13 {dimension_numbers = #tpu.dot_dimension_numbers<[1], [0], [0], [1], [0, 0, 1, 1], [], []>} : vector<16x16xbf16>, vector<16x8xbf16>, vector<16x8xf32> -> vector<16x8xf32>
      %c0_14 = arith.constant 0 : index
      %c0_15 = arith.constant 0 : index
      %26 = vector.load %arg4[%c0_14, %c0_15] : memref<16x8xf32, #tpu.memory_space<vmem>>, vector<16x8xf32>
      tpu.vector_store %arg4[%c0_14, %c0_15], %25 {strides = array<i32>} : memref<16x8xf32, #tpu.memory_space<vmem>>, vector<16x8xf32>,
    } else {
    }
    %c0_i32_4 = arith.constant 0 : i32
    %11 = arith.cmpi sgt, %arg1, %c0_i32_4 : i32
    %12 = arith.extui %11 : i1 to i32
    %c0_i32_5 = arith.constant 0 : i32
    %13 = arith.cmpi ne, %12, %c0_i32_5 : i32
    scf.if %13 {
      %c0_8 = arith.constant 0 : index
      %c0_9 = arith.constant 0 : index
      %17 = vector.load %arg5[%c0_8, %c0_9] : memref<16x1xf32, #tpu.memory_space<vmem>>, vector<16x1xf32>
      %18 = arith.maximumf %17, %7 : vector<16x1xf32>
      %19 = arith.subf %17, %18 : vector<16x1xf32>
      %20 = math.exp %19 : vector<16x1xf32>
      %21 = vector.broadcast %18 : vector<16x1xf32> to vector<16x16xf32>
      %22 = arith.subf %5, %21 : vector<16x16xf32>
      %23 = math.exp %22 : vector<16x16xf32>
      %c0_10 = arith.constant 0 : index
      %c0_11 = arith.constant 0 : index
      %24 = vector.load %arg6[%c0_10, %c0_11] : memref<16x1xf32, #tpu.memory_space<vmem>>, vector<16x1xf32>
      %25 = arith.mulf %20, %24 : vector<16x1xf32>
      %cst_12 = arith.constant dense<0.000000e+00> : vector<16xf32>
      %26 = vector.multi_reduction <add>, %23, %cst_12 [1] : vector<16x16xf32> to vector<16xf32>
      %27 = vector.shape_cast %26 : vector<16xf32> to vector<16x1xf32>
      %28 = arith.addf %25, %27 : vector<16x1xf32>
      %c0_13 = arith.constant 0 : index
      %c0_14 = arith.constant 0 : index
      %29 = vector.load %arg6[%c0_13, %c0_14] : memref<16x1xf32, #tpu.memory_space<vmem>>, vector<16x1xf32>
      tpu.vector_store %arg6[%c0_13, %c0_14], %28 {strides = array<i32>} : memref<16x1xf32, #tpu.memory_space<vmem>>, vector<16x1xf32>,
      %c0_15 = arith.constant 0 : index
      %c0_16 = arith.constant 0 : index
      %30 = vector.load %arg4[%c0_15, %c0_16] : memref<16x8xf32, #tpu.memory_space<vmem>>, vector<16x8xf32>
      %31 = vector.broadcast %20 : vector<16x1xf32> to vector<16x8xf32>
      %32 = arith.mulf %31, %30 : vector<16x8xf32>
      %33 = arith.truncf %23 : vector<16x16xf32> to vector<16x16xbf16>
      %cst_17 = arith.constant dense<0.000000e+00> : vector<16x8xf32>
      %34 = tpu.matmul %33, %3, %cst_17 {dimension_numbers = #tpu.dot_dimension_numbers<[1], [0], [0], [1], [0, 0, 1, 1], [], []>} : vector<16x16xbf16>, vector<16x8xbf16>, vector<16x8xf32> -> vector<16x8xf32>
      %35 = arith.addf %32, %34 : vector<16x8xf32>
      %c0_18 = arith.constant 0 : index
      %c0_19 = arith.constant 0 : index
      %36 = vector.load %arg4[%c0_18, %c0_19] : memref<16x8xf32, #tpu.memory_space<vmem>>, vector<16x8xf32>
      tpu.vector_store %arg4[%c0_18, %c0_19], %35 {strides = array<i32>} : memref<16x8xf32, #tpu.memory_space<vmem>>, vector<16x8xf32>,
      %c0_20 = arith.constant 0 : index
      %c0_21 = arith.constant 0 : index
      %37 = vector.load %arg5[%c0_20, %c0_21] : memref<16x1xf32, #tpu.memory_space<vmem>>, vector<16x1xf32>
      tpu.vector_store %arg5[%c0_20, %c0_21], %18 {strides = array<i32>} : memref<16x1xf32, #tpu.memory_space<vmem>>, vector<16x1xf32>,
    } else {
    }
    %c0_i32_6 = arith.constant 0 : i32
    %14 = arith.cmpi eq, %arg1, %c0_i32_6 : i32
    %15 = arith.extui %14 : i1 to i32
    %c0_i32_7 = arith.constant 0 : i32
    %16 = arith.cmpi ne, %15, %c0_i32_7 : i32
    scf.if %16 {
      %c0_8 = arith.constant 0 : index
      %c0_9 = arith.constant 0 : index
      %17 = vector.load %arg4[%c0_8, %c0_9] : memref<16x8xf32, #tpu.memory_space<vmem>>, vector<16x8xf32>
      %c0_10 = arith.constant 0 : index
      %c0_11 = arith.constant 0 : index
      %18 = vector.load %arg6[%c0_10, %c0_11] : memref<16x1xf32, #tpu.memory_space<vmem>>, vector<16x1xf32>
      %19 = tpu.reciprocal %18 {approx = true} : vector<16x1xf32> -> vector<16x1xf32>
      %20 = vector.broadcast %19 : vector<16x1xf32> to vector<16x8xf32>
      %21 = arith.mulf %17, %20 : vector<16x8xf32>
      %22 = arith.mulf %21, %21 : vector<16x8xf32>
      %23 = vector.extract_strided_slice %22 {offsets = [0, 0], sizes = [16, 1], strides = [1, 1]} : vector<16x8xf32> to vector<16x1xf32>
      %cst_12 = arith.constant dense<0.000000e+00> : vector<16xf32>
      %24 = vector.multi_reduction <add>, %22, %cst_12 [1] : vector<16x8xf32> to vector<16xf32>
      %25 = vector.shape_cast %24 : vector<16xf32> to vector<16x1xf32>
      %26 = arith.subf %25, %23 : vector<16x1xf32>
      %27 = arith.subf %23, %26 : vector<16x1xf32>
      %28 = math.absf %27 : vector<16x1xf32>
      %cst_13 = arith.constant 9.99999993E-9 : f32
      %29 = vector.broadcast %cst_13 : f32 to vector<16x1xf32>
      %30 = arith.maximumf %28, %29 : vector<16x1xf32>
      %31 = math.rsqrt %30 : vector<16x1xf32>
      %32 = vector.broadcast %31 : vector<16x1xf32> to vector<16x8xf32>
      %33 = arith.mulf %21, %32 : vector<16x8xf32>
      %34 = arith.mulf %33, %33 : vector<16x8xf32>
      %35 = vector.extract_strided_slice %34 {offsets = [0, 0], sizes = [16, 1], strides = [1, 1]} : vector<16x8xf32> to vector<16x1xf32>
      %cst_14 = arith.constant dense<0.000000e+00> : vector<16xf32>
      %36 = vector.multi_reduction <add>, %34, %cst_14 [1] : vector<16x8xf32> to vector<16xf32>
      %37 = vector.shape_cast %36 : vector<16xf32> to vector<16x1xf32>
      %38 = arith.subf %37, %35 : vector<16x1xf32>
      %39 = arith.subf %35, %38 : vector<16x1xf32>
      %40 = math.absf %39 : vector<16x1xf32>
      %cst_15 = arith.constant 9.99999993E-9 : f32
      %41 = vector.broadcast %cst_15 : f32 to vector<16x1xf32>
      %42 = arith.maximumf %40, %41 : vector<16x1xf32>
      %43 = math.rsqrt %42 : vector<16x1xf32>
      %44 = vector.broadcast %43 : vector<16x1xf32> to vector<16x8xf32>
      %45 = arith.mulf %33, %44 : vector<16x8xf32>
      %c0_16 = arith.constant 0 : index
      %c0_17 = arith.constant 0 : index
      %46 = vector.load %arg4[%c0_16, %c0_17] : memref<16x8xf32, #tpu.memory_space<vmem>>, vector<16x8xf32>
      tpu.vector_store %arg4[%c0_16, %c0_17], %45 {strides = array<i32>} : memref<16x8xf32, #tpu.memory_space<vmem>>, vector<16x8xf32>,
    } else {
    }
    return
  }
  func.func @transform_0(%arg0: i32, %arg1: i32) -> (i32, i32) {
    %c0_i32 = arith.constant 0 : i32
    %c0_i32_0 = arith.constant 0 : i32
    return %arg0, %c0_i32 : i32, i32
  }
  func.func @transform_1(%arg0: i32, %arg1: i32) -> (i32, i32) {
    %c0_i32 = arith.constant 0 : i32
    %c0_i32_0 = arith.constant 0 : i32
    %c0_i32_1 = arith.constant 0 : i32
    return %c0_i32, %c0_i32_0 : i32, i32
  }
  func.func @transform_2(%arg0: i32, %arg1: i32) -> (i32, i32) {
    %c0_i32 = arith.constant 0 : i32
    %c0_i32_0 = arith.constant 0 : i32
    return %arg0, %c0_i32 : i32, i32
  }
}

</mosaic_0001>

<bundles_post_ra>
// kernel: tpu_custom_call.1
= control target key start
LH: loop header
LB: loop body
LE: loop exit
PB: predicated region body
PF: predicated region fallthrough
CT: control target
= control target key end

     0   :  { %vm31_vm0 = vcmask 64512   ;;  %v399_v0 = vmov 0.0   ;;  %vm400_vm1 = vmmov 0   ;;  %vm79_vm2 = vcmask 130048   ;;  %s458_s1 = inlined_call_operand.vmem [shape: bf16[16,8], index: 1, kind: input, shape index: {}]   ;;  %s459_s0 = inlined_call_operand.vmem [shape: bf16[16,8], index: 0, kind: input, shape index: {}]   ;;  %s460_s2 = inlined_call_operand.vmem [shape: f32[16,8], index: 2, kind: output, shape index: {}]  }
   0x1   :  { %364 = vmatprep.subr.bf16.mxu0 %v399_v0  ;;  %v381_v1 = vld [vmem:[%s458_s1] sm:$0xff]   ;;  %366 = vmatprep.mubr.msk.bf16.mxu0 %vm400_vm1, %v399_v0  ;;  %vm96_vm3 = vcmask 7168   ;;  %v401_v21 = vmov 0  }
   0x2   :  { %370 = vmatprep.subr.bf16.mxu1 %v399_v0  ;;  %372 = vmatprep.mubr.msk.bf16.mxu1 %vm400_vm1, %v399_v0  ;;  %v36_v2 = vsel %vm31_vm0, %v381_v1, 0  ;;  %v382_v3 = vld [vmem:[%s459_s0] sm:$0xff]  }
   0x3   :  { %371 = vmatpush3.bf16.msra.mxu1 %v381_v1  ;;  %365 = vmatpush3.bf16.xpose.msra.mxu0 %v36_v2 }
   0x4   :  { %379 = vset.pattern.permute.xlu0 %v401_v21  ;;  %380 = vset.pattern.permute.xlu1 %v401_v21 }
   0xa   :  { %367 = vmatmul.mubr.msk.bf16.vlgmr.msra.gmra.mrb[0].mxu0 %vm31_vm0, %v382_v3 }
  0xdd   :  { %v72_v4 = vpop.f32.mrb[0].mxu0 }
  0xde   :  { %v368_v5 = vpop.f32.mrb[1].mxu0  ;;  %v80_v6 = vsel %vm79_vm2, %v72_v4, -inf }
  0xdf   :  { %81 = vmax.xlane.f32.xlu0 %v80_v6  ;;  %v75_v7 = vpop.f32.mrb[2].mxu0 }
  0xe0   :  { %v369_v8 = vpop.f32.mrb[3].mxu0  ;;  %v83_v9 = vsel %vm79_vm2, %v75_v7, -inf }
  0xe3   :  { %84 = vmax.xlane.f32.xlu0 %v83_v9 }
 0x16c   :  { %v82_v10 = vpop.xlane.xlu0 %81 }
 0x16d   :  { %v90_v11 = vsub.f32 %v72_v4, %v82_v10 }
 0x16f   :  { %v92_v12 = vmul.f32 1.442695, %v90_v11 }
 0x170   :  { %v85_v13 = vpop.xlane.xlu0 %84 }
 0x171   :  { %383 = vpow2.f32 %v92_v12  ;;  %v91_v14 = vsub.f32 %v75_v7, %v85_v13 }
 0x173   :  { %v94_v15 = vmul.f32 1.442695, %v91_v14 }
 0x175   :  { %385 = vpow2.f32 %v94_v15 }
 0x17b   :  { %v384_v16 = vpop.eup %383 }
 0x17c   :  { %v99_v17 = vsel %vm79_vm2, %v384_v16, 0.0 }
 0x17d   :  { %100 = vadd.xlane.f32.xlu1 %v99_v17 }
 0x17f   :  { %v386_v18 = vpop.eup %385 }
 0x180   :  { %v102_v19 = vsel %vm79_vm2, %v386_v18, 0.0  ;;  %v107_v20 = vpack.c.bf16 %v386_v18, %v384_v16 }
 0x181   :  { %103 = vadd.xlane.f32.xlu1 %v102_v19 }
 0x182   :  { %373 = vmatmul.mubr.msk.bf16.vlgmr.msra.gmra.mrb[0].mxu1 %vm79_vm2, %v107_v20 }
 0x20a   :  { %v101_v22 = vpop.xlane.xlu1 %100 }
 0x20b   :  { %105 = vst.msk [vmem:[#allocation3] sm:$0xff] %vm96_vm3, %v101_v22 }
 0x20e   :  { %v104_v23 = vpop.xlane.xlu1 %103 }
 0x20f   :  { %106 = vst.msk [vmem:[#allocation3 + $0x8] sm:$0xff] %vm96_vm3, %v104_v23 }
 0x212   :  { %v271_v24 = vld [vmem:[#allocation3] sm:$0xff] }
 0x213   :  { %387 = vrcp.f32 %v271_v24 }
 0x216   :  { %v272_v25 = vld [vmem:[#allocation3 + $0x8] sm:$0xff] }
 0x217   :  { %389 = vrcp.f32 %v272_v25 }
 0x21d   :  { %v388_v26 = vpop.eup %387 }
 0x21e   :  { %277 = vperm.xlu0 %379, %v388_v26  }
 0x221   :  { %v390_v27 = vpop.eup %389 }
 0x222   :  { %282 = vperm.xlu1 %380, %v390_v27  }
 0x255   :  { %v146_v28 = vpop.f32.mrb[0].mxu1 }
 0x256   :  { %153 = vst.msk [vmem:[%s460_s2] sm:$0xff] %vm31_vm0, %v146_v28  ;;  %v374_v29 = vpop.f32.mrb[1].mxu1 }
 0x257   :  { %v149_v30 = vpop.f32.mrb[2].mxu1 }
 0x258   :  { %154 = vst.msk [vmem:[%s460_s2 + $0x8] sm:$0xff] %vm31_vm0, %v149_v30  ;;  %v375_v31 = vpop.f32.mrb[3].mxu1 }
 0x25d   :  { %v269_v32 = vld [vmem:[%s460_s2] sm:$0xff] }
 0x25f   :  { %v270_v36 = vld [vmem:[%s460_s2 + $0x8] sm:$0xff] }
 0x29d   :  { %v278_v33 = vpop.permute.xlu0 %277 }
 0x29e   :  { %v285_v34 = vmul.f32 %v278_v33, %v269_v32 }
 0x2a0   :  { %v287_v35 = vmul.f32 %v285_v34, %v285_v34 }
 0x2a1   :  { %v283_v37 = vpop.permute.xlu1 %282 }
 0x2a2   :  { %v286_v38 = vmul.f32 %v283_v37, %v270_v36  ;;  %v289_v39 = vsel %vm31_vm0, %v287_v35, 0.0 }
 0x2a3   :  { %290 = vadd.xlane.f32.xlu1 %v289_v39 }
 0x2a4   :  { %v288_v40 = vmul.f32 %v286_v38, %v286_v38 }
 0x2a6   :  { %v292_v41 = vsel %vm31_vm0, %v288_v40, 0.0 }
 0x2a7   :  { %293 = vadd.xlane.f32.xlu0 %v292_v41 }
 0x330   :  { %v291_v42 = vpop.xlane.xlu1 %290 }
 0x331   :  { %v295_v43 = vsub.f32 %v291_v42, %v287_v35 }
 0x333   :  { %v297_v44 = vsub.f32 %v287_v35, %v295_v43 }
 0x334   :  { %v294_v45 = vpop.xlane.xlu0 %293 }
 0x335   :  { %v299_v46 = vand.u32 2147483647, %v297_v44  ;;  %v296_v47 = vsub.f32 %v294_v45, %v288_v40 }
 0x337   :  { %v301_v48 = vmax.f32 %v299_v46, 1e-08  ;;  %v298_v49 = vsub.f32 %v288_v40, %v296_v47 }
 0x339   :  { %391 = vrsqrt.f32 %v301_v48  ;;  %v300_v50 = vand.u32 2147483647, %v298_v49 }
 0x33b   :  { %v302_v51 = vmax.f32 %v300_v50, 1e-08 }
 0x33d   :  { %393 = vrsqrt.f32 %v302_v51 }
 0x343   :  { %v392_v52 = vpop.eup %391 }
 0x344   :  { %307 = vperm.xlu1 %380, %v392_v52  }
 0x347   :  { %v394_v53 = vpop.eup %393 }
 0x348   :  { %312 = vperm.xlu1 %380, %v394_v53  }
 0x3c3   :  { %v308_v54 = vpop.permute.xlu1 %307 }
 0x3c4   :  { %v315_v55 = vmul.f32 %v308_v54, %v285_v34 }
 0x3c6   :  { %v317_v56 = vmul.f32 %v315_v55, %v315_v55 }
 0x3c7   :  { %v313_v57 = vpop.permute.xlu1 %312 }
 0x3c8   :  { %v316_v58 = vmul.f32 %v313_v57, %v286_v38  ;;  %v319_v59 = vsel %vm31_vm0, %v317_v56, 0.0 }
 0x3c9   :  { %320 = vadd.xlane.f32.xlu1 %v319_v59 }
 0x3ca   :  { %v318_v60 = vmul.f32 %v316_v58, %v316_v58 }
 0x3cc   :  { %v322_v61 = vsel %vm31_vm0, %v318_v60, 0.0 }
 0x3cd   :  { %323 = vadd.xlane.f32.xlu0 %v322_v61 }
 0x456   :  { %v321_v62 = vpop.xlane.xlu1 %320 }
 0x457   :  { %v325_v63 = vsub.f32 %v321_v62, %v317_v56 }
 0x459   :  { %v327_v0 = vsub.f32 %v317_v56, %v325_v63 }
 0x45a   :  { %v324_v1 = vpop.xlane.xlu0 %323 }
 0x45b   :  { %v329_v2 = vand.u32 2147483647, %v327_v0  ;;  %v326_v3 = vsub.f32 %v324_v1, %v318_v60 }
 0x45d   :  { %v331_v4 = vmax.f32 %v329_v2, 1e-08  ;;  %v328_v5 = vsub.f32 %v318_v60, %v326_v3 }
 0x45f   :  { %395 = vrsqrt.f32 %v331_v4  ;;  %v330_v6 = vand.u32 2147483647, %v328_v5 }
 0x461   :  { %v332_v7 = vmax.f32 %v330_v6, 1e-08 }
 0x463   :  { %397 = vrsqrt.f32 %v332_v7 }
 0x469   :  { %v396_v8 = vpop.eup %395 }
 0x46a   :  { %337 = vperm.xlu0 %379, %v396_v8  }
 0x46d   :  { %v398_v9 = vpop.eup %397 }
 0x46e   :  { %342 = vperm.xlu0 %379, %v398_v9  }
 0x4e9   :  { %v338_v10 = vpop.permute.xlu0 %337 }
 0x4ea   :  { %v345_v11 = vmul.f32 %v338_v10, %v315_v55 }
 0x4ec   :  { %347 = vst.msk [vmem:[%s460_s2] sm:$0xff] %vm31_vm0, %v345_v11 }
 0x4ed   :  { %v343_v12 = vpop.permute.xlu0 %342 }
 0x4ee   :  { %v346_v13 = vmul.f32 %v343_v12, %v316_v58 }
 0x4f0   :  { %348 = vst.msk [vmem:[%s460_s2 + $0x8] sm:$0xff] %vm31_vm0, %v346_v13 }

</bundles_post_ra>
